<compile_context>
chip_gen: v6e
topology: v6e:2x2x1
jax: 0.10.0
libtpu: 0.0.40
codegen_flags: <defaults>
</compile_context>

<pallas_src>
import functools
import math

import numpy as np
import jax
import jax.numpy as jnp
from jax import lax
from jax.experimental import pallas as pl
from jax.experimental.pallas import tpu as pltpu

EPS = 1e-12  # torch.nn.functional.normalize default eps


def _ns_kernel_packed(x_ref, seg_ref, w_ref, o_ref, *, precision):
    # x_ref: (TM, L) lane-packed rows; seg_ref: (L, L) block-diag 0/1; w_ref: (1, L)
    x = x_ref[...].astype(jnp.float32)
    sq = x * x
    # Segmented per-row sums, broadcast back across each D-lane group (one MXU op).
    seg_sum = jnp.dot(
        sq,
        seg_ref[...],
        preferred_element_type=jnp.float32,
        precision=precision,
    )
    inv = lax.rsqrt(jnp.maximum(seg_sum, EPS * EPS))
    o_ref[...] = (x * inv * w_ref[...].astype(jnp.float32)).astype(o_ref.dtype)


def _ns_kernel_rowsum(x_ref, w_ref, o_ref):
    # Fallback (no lane packing possible): x_ref is (TM, D).
    x = x_ref[...].astype(jnp.float32)
    sq_sum = jnp.sum(x * x, axis=-1, keepdims=True)
    inv = lax.rsqrt(jnp.maximum(sq_sum, EPS * EPS))
    o_ref[...] = (x * inv * w_ref[...].astype(jnp.float32)).astype(o_ref.dtype)


def _tpu_flavor():
    """Best-effort generation detection (defaults are safe on any chip)."""
    kind = ""
    try:
        kind = jax.devices()[0].device_kind.lower()
    except Exception:
        pass
    is_v5e = ("v5e" in kind) or ("v5 lite" in kind) or ("v5litepod" in kind)
    is_v7 = ("v7" in kind) or ("tpu7" in kind)
    return is_v5e, is_v7


def normalize_scale(bottom: jax.Array, weight: jax.Array,
                    *, target_tile_bytes: int = 4 << 20,
                    vmem_budget_bytes: int = 24 << 20) -> jax.Array:
    """bottom: (B, N, D), weight: (1, D) -> (B, N, D).
    Equivalent to F.normalize(bottom, p=2, dim=2) * weight."""
    B, N, D = bottom.shape
    assert weight.shape == (1, D)
    R = B * N
    dtype = bottom.dtype
    itemsize = jnp.dtype(dtype).itemsize
    is_v5e, is_v7 = _tpu_flavor()

    # --- Lane packing: fold `pack` consecutive D-wide rows into one L-lane row.
    lcm_d = (D * 128) // math.gcd(D, 128)       # lcm(D, 128)
    if lcm_d <= 512:
        L = lcm_d
        pack = L // D
    else:
        L = D                                    # fallback: masked-store path
        pack = 1

    x_flat = bottom.reshape(R, D)
    R_pad = pl.cdiv(R, pack) * pack
    if R_pad != R:
        x_flat = jnp.pad(x_flat, ((0, R_pad - R), (0, 0)))  # zero rows are benign
    Rp = R_pad // pack
    x2d = x_flat.reshape(Rp, L)                  # row-major contiguous reshape
    w_row = jnp.tile(weight, (1, pack)) if pack > 1 else weight  # (1, L)

    # --- Row-tile size (~2-4 MiB, VMEM-budgeted, dtype-aware sublane rounding).
    sub = max(8, 32 // max(1, itemsize))         # 8 f32 / 16 bf16 / 32 int8-fp8 rows
    seg_vmem = (2 * L * L * 4) if pack > 1 else 0
    # Per block element: double-buffered in + out at `itemsize`, plus block-sized
    # f32 intermediates in-kernel (x cast, sq, seg_sum on the MXU path).
    per_elem_vmem = 4 * itemsize + (3 * 4 if pack > 1 else 2 * 4)
    block_elems = max(
        sub * L,
        min((vmem_budget_bytes - seg_vmem) // per_elem_vmem,
            target_tile_bytes // itemsize),
    )
    tm_target = max(sub, block_elems // L)
    # v7x has 2 TensorCores: keep >= 2 grid steps for mid/large inputs so the
    # "parallel" axis actually shards.
    min_steps = 2 if is_v7 else 1
    if min_steps > 1 and Rp > min_steps * sub:
        tm_target = min(tm_target, pl.cdiv(Rp, min_steps))
    if tm_target >= Rp:
        tm = Rp                                  # single full-extent block
    else:
        tm = max(sub, (tm_target // sub) * sub)
    grid = (pl.cdiv(Rp, tm),)

    # --- Advisory cost estimate (includes the seg matmul).
    seg_bytes = (L * L * 4) if pack > 1 else 0
    flops = 3 * R_pad * D + (2 * Rp * L * L if pack > 1 else 0)
    cost = pl.CostEstimate(
        flops=flops,
        transcendentals=R_pad,
        bytes_accessed=2 * Rp * L * itemsize + seg_bytes + L * itemsize,
    )
    cparams = pltpu.CompilerParams(
        dimension_semantics=("parallel",),
        vmem_limit_bytes=32 * 1024 * 1024,       # budget keeps us under this on v7x
    )

    if pack > 1:
        # Block-diagonal 0/1 matrix built host-side (constant, no per-call XLA op).
        li = np.arange(L, dtype=np.int64)[:, None] // D
        lj = np.arange(L, dtype=np.int64)[None, :] // D
        seg = jnp.asarray((li == lj).astype(np.float32))

        # Exact 0/1 operand: HIGH (3 bf16 passes) keeps ~f32 accuracy.  Use it on
        # v5e (slow MXU) and for wide L so the matmul never overtakes HBM time;
        # HIGHEST elsewhere, where it is fully hidden behind streaming.
        precision = (lax.Precision.HIGH
                     if (is_v5e or L > 256) else lax.Precision.HIGHEST)

        out2d = pl.pallas_call(
            functools.partial(_ns_kernel_packed, precision=precision),
            out_shape=jax.ShapeDtypeStruct((Rp, L), dtype),
            grid_spec=pltpu.PrefetchScalarGridSpec(
                num_scalar_prefetch=0,
                grid=grid,
                in_specs=[
                    pl.BlockSpec((tm, L), lambda i: (i, 0)),
                    pl.BlockSpec((L, L), lambda i: (0, 0)),
                    pl.BlockSpec((1, L), lambda i: (0, 0)),
                ],
                out_specs=pl.BlockSpec((tm, L), lambda i: (i, 0)),
            ),
            compiler_params=cparams,
            cost_estimate=cost,
        )(x2d, seg, w_row)
    else:
        # TODO(synk): D with lcm(D,128) > 512 falls back to masked (lane-padded)
        # stores; acceptable but not lane-dense.
        out2d = pl.pallas_call(
            _ns_kernel_rowsum,
            out_shape=jax.ShapeDtypeStruct((Rp, L), dtype),
            grid_spec=pltpu.PrefetchScalarGridSpec(
                num_scalar_prefetch=0,
                grid=grid,
                in_specs=[
                    pl.BlockSpec((tm, L), lambda i: (i, 0)),
                    pl.BlockSpec((1, L), lambda i: (0, 0)),
                ],
                out_specs=pl.BlockSpec((tm, L), lambda i: (i, 0)),
            ),
            compiler_params=cparams,
            cost_estimate=cost,
        )(x2d, w_row)

    out = out2d.reshape(R_pad, D)
    if R_pad != R:
        out = out[:R]
    return out.reshape(B, N, D)


def reference_normalize_scale(bottom, weight):
    x = bottom.astype(jnp.float32)
    norm = jnp.sqrt(jnp.sum(x * x, axis=2, keepdims=True))
    norm = jnp.maximum(norm, EPS)
    return ((x / norm) * weight).astype(bottom.dtype)


if __name__ == "__main__":
    # Module params: dim=32, init_norm=20 -> weight = ones(1, dim) * 20
    dim = 32
    init_norm = 20.0
    weight = jnp.ones((1, dim), dtype=jnp.float32) * init_norm

    # Input implied by forward: (batch, seq, dim)
    B, N = 2, 8
    key = jax.random.PRNGKey(0)
    bottom = jax.random.normal(key, (B, N, dim), dtype=jnp.float32)

    out = jax.block_until_ready(normalize_scale(bottom, weight))
    ref = reference_normalize_scale(bottom, weight)

    assert out.shape == (B, N, dim)
    assert jnp.allclose(out, ref, atol=2e-5, rtol=1e-5), "mismatch vs reference"

    print("KERNEL_OK")
</pallas_src>

<mosaic_0001>
module attributes {stable_mosaic.version = 11 : i64} {
  func.func @_ns_kernel_packed(%arg0: i32, %arg1: memref<4x128xf32, #tpu.memory_space<vmem>>, %arg2: memref<128x128xf32, #tpu.memory_space<vmem>>, %arg3: memref<1x128xf32, #tpu.memory_space<vmem>>, %arg4: memref<4x128xf32, #tpu.memory_space<vmem>>) attributes {dimension_semantics = [#tpu.dimension_semantics<parallel>], iteration_bounds = array<i64: 1>, scalar_prefetch = 0 : i64, scratch_operands = 0 : i64, tpu.core_type = #tpu.core_type<tc>, window_params = [{transform_indices = @transform_0, window_bounds = array<i64: 4, 128>}, {pipeline_mode = #tpu.pipeline_mode<synchronous>, transform_indices = @transform_1, window_bounds = array<i64: 128, 128>}, {pipeline_mode = #tpu.pipeline_mode<synchronous>, transform_indices = @transform_2, window_bounds = array<i64: 1, 128>}, {transform_indices = @transform_3, window_bounds = array<i64: 4, 128>}]} {
    %c0 = arith.constant 0 : index
    %c0_0 = arith.constant 0 : index
    %0 = vector.load %arg1[%c0, %c0_0] : memref<4x128xf32, #tpu.memory_space<vmem>>, vector<4x128xf32>
    %1 = arith.mulf %0, %0 : vector<4x128xf32>
    %c0_1 = arith.constant 0 : index
    %c0_2 = arith.constant 0 : index
    %2 = vector.load %arg2[%c0_1, %c0_2] : memref<128x128xf32, #tpu.memory_space<vmem>>, vector<128x128xf32>
    %cst = arith.constant dense<0.000000e+00> : vector<4x128xf32>
    %3 = tpu.matmul %1, %2, %cst {dimension_numbers = #tpu.dot_dimension_numbers<[1], [0], [0], [1], [0, 0, 1, 1], [], []>, precision = #tpu.contract_precision<fp32>} : vector<4x128xf32>, vector<128x128xf32>, vector<4x128xf32> -> vector<4x128xf32>
    %cst_3 = arith.constant 1.000000e-24 : f32
    %4 = vector.broadcast %cst_3 : f32 to vector<4x128xf32>
    %5 = arith.maximumf %3, %4 : vector<4x128xf32>
    %6 = math.rsqrt %5 : vector<4x128xf32>
    %7 = arith.mulf %0, %6 : vector<4x128xf32>
    %c0_4 = arith.constant 0 : index
    %c0_5 = arith.constant 0 : index
    %8 = vector.load %arg3[%c0_4, %c0_5] : memref<1x128xf32, #tpu.memory_space<vmem>>, vector<1x128xf32>
    %9 = vector.broadcast %8 : vector<1x128xf32> to vector<4x128xf32>
    %10 = arith.mulf %7, %9 : vector<4x128xf32>
    %c0_6 = arith.constant 0 : index
    %c0_7 = arith.constant 0 : index
    %11 = vector.load %arg4[%c0_6, %c0_7] : memref<4x128xf32, #tpu.memory_space<vmem>>, vector<4x128xf32>
    tpu.vector_store %arg4[%c0_6, %c0_7], %10 {strides = array<i32>} : memref<4x128xf32, #tpu.memory_space<vmem>>, vector<4x128xf32>,
    return
  }
  func.func @transform_0(%arg0: i32) -> (i32, i32) {
    %c0_i32 = arith.constant 0 : i32
    %c0_i32_0 = arith.constant 0 : i32
    return %arg0, %c0_i32 : i32, i32
  }
  func.func @transform_1(%arg0: i32) -> (i32, i32) {
    %c0_i32 = arith.constant 0 : i32
    %c0_i32_0 = arith.constant 0 : i32
    %c0_i32_1 = arith.constant 0 : i32
    return %c0_i32, %c0_i32_0 : i32, i32
  }
  func.func @transform_2(%arg0: i32) -> (i32, i32) {
    %c0_i32 = arith.constant 0 : i32
    %c0_i32_0 = arith.constant 0 : i32
    %c0_i32_1 = arith.constant 0 : i32
    return %c0_i32, %c0_i32_0 : i32, i32
  }
  func.func @transform_3(%arg0: i32) -> (i32, i32) {
    %c0_i32 = arith.constant 0 : i32
    %c0_i32_0 = arith.constant 0 : i32
    return %arg0, %c0_i32 : i32, i32
  }
}

</mosaic_0001>

<bundles_post_ra>
// kernel: tpu_custom_call.1
= control target key start
LH: loop header
LB: loop body
LE: loop exit
PB: predicated region body
PF: predicated region fallthrough
CT: control target
= control target key end

     0   :  { %8 = vsyncpa [#allocation3], 0  ;;  %s1523_s0 = inlined_call_operand.hbm [shape: f32[4,128], index: 0, kind: input, shape index: {}]   ;;  %s1524_s1 = inlined_call_operand.hbm [shape: f32[128,128], index: 1, kind: input, shape index: {}]   ;;  %s1525_s2 = inlined_call_operand.vmem [shape: f32[1,128], index: 2, kind: input, shape index: {}]   ;;  %s1526_s3 = inlined_call_operand.hbm [shape: f32[4,128], index: 3, kind: output, shape index: {}]  }
   0x1   :  { %9 = vsyncpa [#allocation6], 0 }
   0x2   :  { %10 = vsyncpa [#allocation4], 0  ;;  %s1116_s12 = smov [#allocation2]   ;;  %s1117_s14 = smov [#allocation5]  }
   0x3   :  { %s17_s13 = sshll.u32 %s1116_s12, 4  ;;  %s26_s15 = sshll.u32 %s1117_s14, 4  ;;  %s18_s13 = int_to_ptr.vmem [resolvable:$true] %s17_s13  ;;  %s27_s15 = int_to_ptr.vmem [resolvable:$true] %s26_s15 }
   0x4   :  { %s1058_s16 = scalar_lea.vmem %s18_s13, 64  ;;  %p1063_p1 = scmp.lt.s32.totalorder %s18_s13, %s18_s13 }
   0x5   :  { %p1059_p0 = scmp.ne.s32.totalorder %s18_s13, %s1058_s16  ;;  %p1064_p2 = scmp.lt.s32.totalorder %s1058_s16, %s1058_s16 }
   0x7   :  { %p1065_p3 = por %p1064_p2, %p1063_p1 }
   0x9   :  { %p1066_p4 = pnand %p1065_p3, %p1059_p0 }
   0xb   :  { %1069 = shalt.err (!%p1066_p4)
}
   0xc   :  { %20 = dma.hbm_to_vmem [thread:$0]  %s1523_s0, 64, %s18_s13, [#allocation3]  }
   0xd   :  { %s1078_s19 = scalar_lea.vmem %s27_s15, 2048  ;;  %p1083_p6 = scmp.lt.s32.totalorder %s27_s15, %s27_s15 }
   0xe   :  { %p1079_p5 = scmp.ne.s32.totalorder %s27_s15, %s1078_s19  ;;  %p1084_p7 = scmp.lt.s32.totalorder %s1078_s19, %s1078_s19 }
  0x10   :  { %p1085_p8 = por %p1084_p7, %p1083_p6 }
  0x12   :  { %p1086_p9 = pnand %p1085_p8, %p1079_p5 }
  0x14   :  { %1089 = shalt.err (!%p1086_p9)
}
  0x15   :  { %s1118_s20 = smov 128   ;;  %s1119_s21 = smov 8  }
  0x16   :  { %32 = dma.hbm_to_vmem [thread:$0]  %s1524_s1, 2048, %s27_s15, [#allocation6], %s1118_s20, %s1118_s20, %s1119_s21  }
  0x17   :  { %1110 = dma.done.wait [#allocation3], 64  }
  0x18   :  { %1111 = vsyncadd [#allocation3], 4294967232 }
  0x19   :  { %1112 = dma.done.wait [#allocation6], 2048  }
  0x1a   :  { %1113 = vsyncadd [#allocation6], 4294965248  ;;  %v1120_v0 = vmov 0.0   ;;  %vm1121_vm0 = vmmov 0   ;;  %v58_v1 = vld [vmem:[#allocation5 + $0x78] sm:$0xff]  ;;  %v57_v2 = vld [vmem:[#allocation5 + $0x70] sm:$0xff] }
  0x1b   :  { %831 = vmatprep.subr.mxu0 %v1120_v0  ;;  %866 = vmatprep.subr.mxu1 %v1120_v0  ;;  %v56_v3 = vld [vmem:[#allocation5 + $0x68] sm:$0xff]  ;;  %v1155_v4 = vand.u32 4294901760, %v58_v1  ;;  %v1157_v5 = vand.u32 4294901760, %v57_v2  ;;  %v55_v7 = vld [vmem:[#allocation5 + $0x60] sm:$0xff]  ;;  %v54_v8 = vld [vmem:[#allocation5 + $0x58] sm:$0xff]  ;;  %s1122_s24 = smov [#allocation7]  }
  0x1c   :  { %863 = vmatprep.mubr.msk.f32.mxu0 %vm1121_vm0, %v1120_v0  ;;  %898 = vmatprep.mubr.msk.f32.mxu1 %vm1121_vm0, %v1120_v0  ;;  %v1159_v6 = vand.u32 4294901760, %v56_v3  ;;  %v53_v9 = vld [vmem:[#allocation5 + $0x50] sm:$0xff]  ;;  %v1161_v10 = vand.u32 4294901760, %v55_v7  ;;  %v1163_v11 = vand.u32 4294901760, %v54_v8  ;;  %v52_v13 = vld [vmem:[#allocation5 + $0x48] sm:$0xff]  ;;  %v51_v14 = vld [vmem:[#allocation5 + $0x40] sm:$0xff] }
  0x1d   :  { %v1165_v12 = vand.u32 4294901760, %v53_v9  ;;  %832 = vmatpush3.msra.mxu0 %v1155_v4  ;;  %v1169_v15 = vsub.f32 %v58_v1, %v1155_v4  ;;  %v1172_v16 = vsub.f32 %v57_v2, %v1157_v5  ;;  %v1174_v17 = vand.u32 4294901760, %v52_v13  ;;  %v50_v19 = vld [vmem:[#allocation5 + $0x38] sm:$0xff]  ;;  %v49_v26 = vld [vmem:[#allocation5 + $0x30] sm:$0xff]  ;;  %v48_v34 = vld [vmem:[#allocation5 + $0x28] sm:$0xff]  ;;  %s718_s25 = sshll.u32 %s1122_s24, 4  ;;  %s719_s25 = int_to_ptr.vmem [resolvable:$true] %s718_s25 }
  0x1e   :  { %v1177_v18 = vsub.f32 %v56_v3, %v1159_v6  ;;  %833 = vmatprep.subr.mxu0 %v1120_v0  ;;  %v1181_v20 = vsub.f32 %v55_v7, %v1161_v10  ;;  %v1184_v21 = vsub.f32 %v54_v8, %v1163_v11  ;;  %v1190_v25 = vand.u32 4294901760, %v51_v14  ;;  %v47_v41 = vld [vmem:[#allocation5 + $0x20] sm:$0xff]  ;;  %v1235_v48 = vld [vmem:[#allocation2] sm:$0xf]  ;;  %v45_v54 = vld [vmem:[#allocation5 + $0x10] sm:$0xff]  ;;  %s1090_s26 = scalar_lea.vmem %s719_s25, 64  ;;  %p1095_p11 = scmp.lt.s32.totalorder %s719_s25, %s719_s25 }
  0x1f   :  { %834 = vmatpush3.msra.mxu0 %v1157_v5  ;;  %v153_v22 = vand.u32 4294901760, %v1169_v15  ;;  %v160_v23 = vand.u32 4294901760, %v1172_v16  ;;  %v1194_v28 = vand.u32 4294901760, %v50_v19  ;;  %v1198_v30 = vsub.f32 %v53_v9, %v1165_v12  ;;  %v46_v50 = vld [vmem:[#allocation5 + $0x18] sm:$0xff]  ;;  %v44_v61 = vld [vmem:[#allocation5 + $0x8] sm:$0xff]  ;;  %v43_v8 = vld [vmem:[#allocation5] sm:$0xff]  ;;  %p1091_p10 = scmp.ne.s32.totalorder %s719_s25, %s1090_s26  ;;  %p1096_p12 = scmp.lt.s32.totalorder %s1090_s26, %s1090_s26 }
  0x20   :  { %v167_v24 = vand.u32 4294901760, %v1177_v18  ;;  %835 = vmatprep.subr.mxu0 %v1120_v0  ;;  %v174_v27 = vand.u32 4294901760, %v1181_v20  ;;  %v181_v29 = vand.u32 4294901760, %v1184_v21  ;;  %v1211_v35 = vsub.f32 %v52_v13, %v1174_v17 }
  0x21   :  { %836 = vmatpush3.msra.mxu0 %v1159_v6  ;;  %v154_v31 = vsub.f32 %v1169_v15, %v153_v22  ;;  %v161_v32 = vsub.f32 %v1172_v16, %v160_v23  ;;  %v1214_v36 = vand.u32 4294901760, %v49_v26  ;;  %v188_v40 = vand.u32 4294901760, %v1198_v30  ;;  %p1097_p13 = por %p1096_p12, %p1095_p11 }
  0x22   :  { %v168_v33 = vsub.f32 %v1177_v18, %v167_v24  ;;  %837 = vmatprep.subr.mxu0 %v1120_v0  ;;  %v175_v39 = vsub.f32 %v1181_v20, %v174_v27  ;;  %v1222_v42 = vand.u32 4294901760, %v48_v34  ;;  %v1225_v43 = vsub.f32 %v51_v14, %v1190_v25 }
  0x23   :  { %838 = vmatpush3.msra.mxu0 %v1161_v10  ;;  %v155_v37 = vand.u32 4294901760, %v154_v31  ;;  %v162_v38 = vand.u32 4294901760, %v161_v32  ;;  %v182_v45 = vsub.f32 %v1184_v21, %v181_v29  ;;  %v195_v46 = vand.u32 4294901760, %v1211_v35  ;;  %p1098_p0 = pnand %p1097_p13, %p1091_p10 }
  0x24   :  { %839 = vmatprep.subr.mxu0 %v1120_v0  ;;  %v169_v44 = vand.u32 4294901760, %v168_v33  ;;  %v1233_v47 = vsub.f32 %v50_v19, %v1194_v28  ;;  %v1239_v49 = vand.u32 4294901760, %v47_v41  ;;  %v176_v51 = vand.u32 4294901760, %v175_v39 }
  0x25   :  { %840 = vmatpush3.msra.mxu0 %v1163_v11  ;;  %867 = vmatpush3.msra.mxu1 %v155_v37  ;;  %v189_v52 = vsub.f32 %v1198_v30, %v188_v40  ;;  %v202_v53 = vand.u32 4294901760, %v1225_v43  ;;  %v1247_v55 = vsub.f32 %v49_v26, %v1214_v36  ;;  %v42_v57 = vmul.f32 %v1235_v48, %v1235_v48 }
  0x26   :  { %841 = vmatprep.subr.mxu0 %v1120_v0  ;;  %868 = vmatprep.subr.mxu1 %v1120_v0  ;;  %v209_v56 = vand.u32 4294901760, %v1233_v47  ;;  %v183_v58 = vand.u32 4294901760, %v182_v45  ;;  %v196_v59 = vsub.f32 %v1211_v35, %v195_v46  ;;  %v1258_v60 = vand.u32 4294901760, %v46_v50 }
  0x27   :  { %842 = vmatpush3.msra.mxu0 %v1165_v12  ;;  %869 = vmatpush3.msra.mxu1 %v162_v38  ;;  %v1261_v62 = vsub.f32 %v48_v34, %v1222_v42  ;;  %v1265_v63 = vand.u32 4294901760, %v45_v54  ;;  %v1267_v1 = vand.u32 4294901760, %v42_v57  ;;  %v190_v2 = vand.u32 4294901760, %v189_v52 }
  0x28   :  { %843 = vmatprep.subr.mxu0 %v1120_v0  ;;  %870 = vmatprep.subr.mxu1 %v1120_v0  ;;  %v203_v3 = vsub.f32 %v1225_v43, %v202_v53  ;;  %v216_v7 = vand.u32 4294901760, %v1247_v55  ;;  %v1275_v9 = vsub.f32 %v47_v41, %v1239_v49  ;;  %v210_v13 = vsub.f32 %v1233_v47, %v209_v56 }
  0x29   :  { %844 = vmatpush3.msra.mxu0 %v1174_v17  ;;  %871 = vmatpush3.msra.mxu1 %v169_v44  ;;  %v1282_v14 = vand.u32 4294901760, %v44_v61  ;;  %v197_v19 = vand.u32 4294901760, %v196_v59  ;;  %v223_v26 = vand.u32 4294901760, %v1261_v62  ;;  %v1287_v31 = vsub.f32 %v42_v57, %v1267_v1 }
  0x2a   :  { %845 = vmatprep.subr.mxu0 %v1120_v0  ;;  %872 = vmatprep.subr.mxu1 %v1120_v0  ;;  %v1290_v32 = vsub.f32 %v46_v50, %v1258_v60  ;;  %v1294_v33 = vand.u32 4294901760, %v43_v8  ;;  %v204_v34 = vand.u32 4294901760, %v203_v3  ;;  %v217_v37 = vsub.f32 %v1247_v55, %v216_v7 }
  0x2b   :  { %846 = vmatpush3.msra.mxu0 %v1190_v25  ;;  %873 = vmatpush3.msra.mxu1 %v176_v51  ;;  %v230_v38 = vand.u32 4294901760, %v1275_v9  ;;  %v1302_v39 = vsub.f32 %v45_v54, %v1265_v63  ;;  %v211_v41 = vand.u32 4294901760, %v210_v13  ;;  %v224_v44 = vsub.f32 %v1261_v62, %v223_v26 }
  0x2c   :  { %847 = vmatprep.subr.mxu0 %v1120_v0  ;;  %874 = vmatprep.subr.mxu1 %v1120_v0  ;;  %v142_v45 = vand.u32 4294901760, %v1287_v31  ;;  %v237_v50 = vand.u32 4294901760, %v1290_v32  ;;  %v1313_v51 = vsub.f32 %v44_v61, %v1282_v14  ;;  %v218_v52 = vand.u32 4294901760, %v217_v37 }
  0x2d   :  { %848 = vmatpush3.msra.mxu0 %v1194_v28  ;;  %875 = vmatpush3.msra.mxu1 %v183_v58  ;;  %v231_v54 = vsub.f32 %v1275_v9, %v230_v38  ;;  %v244_v57 = vand.u32 4294901760, %v1302_v39  ;;  %v1323_v58 = vsub.f32 %v43_v8, %v1294_v33  ;;  %v225_v59 = vand.u32 4294901760, %v224_v44 }
  0x2e   :  { %849 = vmatprep.subr.mxu0 %v1120_v0  ;;  %876 = vmatprep.subr.mxu1 %v1120_v0  ;;  %v143_v61 = vsub.f32 %v1287_v31, %v142_v45  ;;  %v251_v3 = vand.u32 4294901760, %v1313_v51 }
  0x2f   :  { %850 = vmatpush3.msra.mxu0 %v1214_v36  ;;  %877 = vmatpush3.msra.mxu1 %v190_v2  ;;  %v238_v2 = vsub.f32 %v1290_v32, %v237_v50  ;;  %v232_v8 = vand.u32 4294901760, %v231_v54  ;;  %v245_v13 = vsub.f32 %v1302_v39, %v244_v57 }
  0x30   :  { %851 = vmatprep.subr.mxu0 %v1120_v0  ;;  %878 = vmatprep.subr.mxu1 %v1120_v0 }
  0x31   :  { %852 = vmatpush3.msra.mxu0 %v1222_v42  ;;  %879 = vmatpush3.msra.mxu1 %v197_v19  ;;  %v258_v19 = vand.u32 4294901760, %v1323_v58  ;;  %v239_v37 = vand.u32 4294901760, %v238_v2  ;;  %v246_v44 = vand.u32 4294901760, %v245_v13 }
  0x32   :  { %853 = vmatprep.subr.mxu0 %v1120_v0  ;;  %880 = vmatprep.subr.mxu1 %v1120_v0 }
  0x33   :  { %854 = vmatpush3.msra.mxu0 %v1239_v49  ;;  %881 = vmatpush3.msra.mxu1 %v204_v34  ;;  %v144_v34 = vand.u32 4294901760, %v143_v61 }
  0x34   :  { %855 = vmatprep.subr.mxu0 %v1120_v0  ;;  %882 = vmatprep.subr.mxu1 %v1120_v0 }
  0x35   :  { %856 = vmatpush3.msra.mxu0 %v1258_v60  ;;  %883 = vmatpush3.msra.mxu1 %v211_v41  ;;  %v252_v41 = vsub.f32 %v1313_v51, %v251_v3 }
  0x36   :  { %857 = vmatprep.subr.mxu0 %v1120_v0  ;;  %884 = vmatprep.subr.mxu1 %v1120_v0 }
  0x37   :  { %858 = vmatpush3.msra.mxu0 %v1265_v63  ;;  %885 = vmatpush3.msra.mxu1 %v218_v52  ;;  %v259_v52 = vsub.f32 %v1323_v58, %v258_v19  ;;  %v253_v54 = vand.u32 4294901760, %v252_v41 }
  0x38   :  { %859 = vmatprep.subr.mxu0 %v1120_v0  ;;  %886 = vmatprep.subr.mxu1 %v1120_v0 }
  0x39   :  { %860 = vmatpush3.msra.mxu0 %v1282_v14  ;;  %887 = vmatpush3.msra.mxu1 %v225_v59  ;;  %v260_v59 = vand.u32 4294901760, %v259_v52 }
  0x3a   :  { %861 = vmatprep.subr.mxu0 %v1120_v0  ;;  %888 = vmatprep.subr.mxu1 %v1120_v0 }
  0x3b   :  { %862 = vmatpush3.msra.mxu0 %v1294_v33  ;;  %889 = vmatpush3.msra.mxu1 %v232_v8 }
  0x3c   :  { %890 = vmatprep.subr.mxu1 %v1120_v0  ;;  %901 = vmatprep.subr.mxu0 %v1120_v0 }
  0x3d   :  { %864 = vmatmul.mubr.f32.vlgmr.msra.gmra.mxu0 %v144_v34  ;;  %891 = vmatpush3.msra.mxu1 %v239_v37 }
  0x3e   :  { %902 = vmatpush3.msra.mxu0 %v1169_v15  ;;  %892 = vmatprep.subr.mxu1 %v1120_v0 }
  0x3f   :  { %903 = vmatprep.subr.mxu0 %v1120_v0  ;;  %893 = vmatpush3.msra.mxu1 %v246_v44 }
  0x40   :  { %904 = vmatpush3.msra.mxu0 %v1172_v16  ;;  %894 = vmatprep.subr.mxu1 %v1120_v0 }
  0x41   :  { %905 = vmatprep.subr.mxu0 %v1120_v0  ;;  %895 = vmatpush3.msra.mxu1 %v253_v54 }
  0x42   :  { %906 = vmatpush3.msra.mxu0 %v1177_v18  ;;  %896 = vmatprep.subr.mxu1 %v1120_v0 }
  0x43   :  { %907 = vmatprep.subr.mxu0 %v1120_v0  ;;  %897 = vmatpush3.msra.mxu1 %v260_v59 }
  0x44   :  { %908 = vmatpush3.msra.mxu0 %v1181_v20  ;;  %899 = vmatmul.mubr.f32.vlgmr.msra.gmra.mxu1 %v1267_v1 }
  0x45   :  { %909 = vmatprep.subr.mxu0 %v1120_v0  ;;  %936 = vmatprep.subr.mxu1 %v1120_v0 }
  0x46   :  { %910 = vmatpush3.msra.mxu0 %v1184_v21  ;;  %937 = vmatpush3.msra.mxu1 %v1155_v4 }
  0x47   :  { %911 = vmatprep.subr.mxu0 %v1120_v0  ;;  %938 = vmatprep.subr.mxu1 %v1120_v0 }
  0x48   :  { %912 = vmatpush3.msra.mxu0 %v1198_v30  ;;  %939 = vmatpush3.msra.mxu1 %v1157_v5 }
  0x49   :  { %913 = vmatprep.subr.mxu0 %v1120_v0  ;;  %940 = vmatprep.subr.mxu1 %v1120_v0 }
  0x4a   :  { %914 = vmatpush3.msra.mxu0 %v1211_v35  ;;  %941 = vmatpush3.msra.mxu1 %v1159_v6 }
  0x4b   :  { %915 = vmatprep.subr.mxu0 %v1120_v0  ;;  %942 = vmatprep.subr.mxu1 %v1120_v0 }
  0x4c   :  { %916 = vmatpush3.msra.mxu0 %v1225_v43  ;;  %943 = vmatpush3.msra.mxu1 %v1161_v10 }
  0x4d   :  { %917 = vmatprep.subr.mxu0 %v1120_v0  ;;  %944 = vmatprep.subr.mxu1 %v1120_v0 }
  0x4e   :  { %918 = vmatpush3.msra.mxu0 %v1233_v47  ;;  %945 = vmatpush3.msra.mxu1 %v1163_v11 }
  0x4f   :  { %919 = vmatprep.subr.mxu0 %v1120_v0  ;;  %946 = vmatprep.subr.mxu1 %v1120_v0 }
  0x50   :  { %920 = vmatpush3.msra.mxu0 %v1247_v55  ;;  %947 = vmatpush3.msra.mxu1 %v1165_v12 }
  0x51   :  { %921 = vmatprep.subr.mxu0 %v1120_v0  ;;  %948 = vmatprep.subr.mxu1 %v1120_v0 }
  0x52   :  { %922 = vmatpush3.msra.mxu0 %v1261_v62  ;;  %949 = vmatpush3.msra.mxu1 %v1174_v17 }
  0x53   :  { %923 = vmatprep.subr.mxu0 %v1120_v0  ;;  %950 = vmatprep.subr.mxu1 %v1120_v0 }
  0x54   :  { %924 = vmatpush3.msra.mxu0 %v1275_v9  ;;  %951 = vmatpush3.msra.mxu1 %v1190_v25 }
  0x55   :  { %925 = vmatprep.subr.mxu0 %v1120_v0  ;;  %952 = vmatprep.subr.mxu1 %v1120_v0 }
  0x56   :  { %926 = vmatpush3.msra.mxu0 %v1290_v32  ;;  %953 = vmatpush3.msra.mxu1 %v1194_v28 }
  0x57   :  { %927 = vmatprep.subr.mxu0 %v1120_v0  ;;  %954 = vmatprep.subr.mxu1 %v1120_v0 }
  0x58   :  { %928 = vmatpush3.msra.mxu0 %v1302_v39  ;;  %955 = vmatpush3.msra.mxu1 %v1214_v36 }
  0x59   :  { %929 = vmatprep.subr.mxu0 %v1120_v0  ;;  %956 = vmatprep.subr.mxu1 %v1120_v0 }
  0x5a   :  { %930 = vmatpush3.msra.mxu0 %v1313_v51  ;;  %957 = vmatpush3.msra.mxu1 %v1222_v42 }
  0x5b   :  { %931 = vmatprep.subr.mxu0 %v1120_v0  ;;  %958 = vmatprep.subr.mxu1 %v1120_v0 }
  0x5c   :  { %932 = vmatpush3.msra.mxu0 %v1323_v58  ;;  %933 = vmatprep.mubr.msk.f32.mxu0 %vm1121_vm0, %v1120_v0 }
  0x5d   :  { %959 = vmatpush3.msra.mxu1 %v1239_v49  ;;  %934 = vmatmul.mubr.f32.vlgmr.msra.gmra.mxu0 %v1287_v31 }
  0x5e   :  { %960 = vmatprep.subr.mxu1 %v1120_v0  ;;  %971 = vmatprep.subr.mxu0 %v1120_v0 }
  0x5f   :  { %961 = vmatpush3.msra.mxu1 %v1258_v60  ;;  %972 = vmatpush3.msra.mxu0 %v153_v22 }
  0x60   :  { %962 = vmatprep.subr.mxu1 %v1120_v0  ;;  %973 = vmatprep.subr.mxu0 %v1120_v0 }
  0x61   :  { %963 = vmatpush3.msra.mxu1 %v1265_v63  ;;  %974 = vmatpush3.msra.mxu0 %v160_v23 }
  0x62   :  { %964 = vmatprep.subr.mxu1 %v1120_v0  ;;  %975 = vmatprep.subr.mxu0 %v1120_v0 }
  0x63   :  { %965 = vmatpush3.msra.mxu1 %v1282_v14  ;;  %976 = vmatpush3.msra.mxu0 %v167_v24 }
  0x64   :  { %966 = vmatprep.subr.mxu1 %v1120_v0  ;;  %977 = vmatprep.subr.mxu0 %v1120_v0 }
  0x65   :  { %967 = vmatpush3.msra.mxu1 %v1294_v33  ;;  %968 = vmatprep.mubr.msk.f32.mxu1 %vm1121_vm0, %v1120_v0 }
  0x66   :  { %978 = vmatpush3.msra.mxu0 %v174_v27  ;;  %969 = vmatmul.mubr.f32.vlgmr.msra.gmra.mxu1 %v142_v45 }
  0x67   :  { %979 = vmatprep.subr.mxu0 %v1120_v0  ;;  %1006 = vmatprep.subr.mxu1 %v1120_v0 }
  0x68   :  { %980 = vmatpush3.msra.mxu0 %v181_v29  ;;  %1007 = vmatpush3.msra.mxu1 %v1155_v4  ;;  %v728_v29 = vld [vmem:[%s1525_s2] ss:$0 sm:$0xff] }
  0x69   :  { %981 = vmatprep.subr.mxu0 %v1120_v0  ;;  %1008 = vmatprep.subr.mxu1 %v1120_v0 }
  0x6a   :  { %982 = vmatpush3.msra.mxu0 %v188_v40  ;;  %1009 = vmatpush3.msra.mxu1 %v1157_v5 }
  0x6b   :  { %983 = vmatprep.subr.mxu0 %v1120_v0  ;;  %1010 = vmatprep.subr.mxu1 %v1120_v0 }
  0x6c   :  { %984 = vmatpush3.msra.mxu0 %v195_v46  ;;  %1011 = vmatpush3.msra.mxu1 %v1159_v6 }
  0x6d   :  { %985 = vmatprep.subr.mxu0 %v1120_v0  ;;  %1012 = vmatprep.subr.mxu1 %v1120_v0 }
  0x6e   :  { %986 = vmatpush3.msra.mxu0 %v202_v53  ;;  %1013 = vmatpush3.msra.mxu1 %v1161_v10 }
  0x6f   :  { %987 = vmatprep.subr.mxu0 %v1120_v0  ;;  %1014 = vmatprep.subr.mxu1 %v1120_v0 }
  0x70   :  { %988 = vmatpush3.msra.mxu0 %v209_v56  ;;  %1015 = vmatpush3.msra.mxu1 %v1163_v11 }
  0x71   :  { %989 = vmatprep.subr.mxu0 %v1120_v0  ;;  %1016 = vmatprep.subr.mxu1 %v1120_v0 }
  0x72   :  { %990 = vmatpush3.msra.mxu0 %v216_v7  ;;  %1017 = vmatpush3.msra.mxu1 %v1165_v12 }
  0x73   :  { %991 = vmatprep.subr.mxu0 %v1120_v0  ;;  %1018 = vmatprep.subr.mxu1 %v1120_v0 }
  0x74   :  { %992 = vmatpush3.msra.mxu0 %v223_v26  ;;  %1019 = vmatpush3.msra.mxu1 %v1174_v17 }
  0x75   :  { %993 = vmatprep.subr.mxu0 %v1120_v0  ;;  %1020 = vmatprep.subr.mxu1 %v1120_v0 }
  0x76   :  { %994 = vmatpush3.msra.mxu0 %v230_v38  ;;  %1021 = vmatpush3.msra.mxu1 %v1190_v25 }
  0x77   :  { %995 = vmatprep.subr.mxu0 %v1120_v0  ;;  %1022 = vmatprep.subr.mxu1 %v1120_v0 }
  0x78   :  { %996 = vmatpush3.msra.mxu0 %v237_v50  ;;  %1023 = vmatpush3.msra.mxu1 %v1194_v28 }
  0x79   :  { %997 = vmatprep.subr.mxu0 %v1120_v0  ;;  %1024 = vmatprep.subr.mxu1 %v1120_v0 }
  0x7a   :  { %998 = vmatpush3.msra.mxu0 %v244_v57  ;;  %1025 = vmatpush3.msra.mxu1 %v1214_v36 }
  0x7b   :  { %999 = vmatprep.subr.mxu0 %v1120_v0  ;;  %1026 = vmatprep.subr.mxu1 %v1120_v0 }
  0x7c   :  { %1000 = vmatpush3.msra.mxu0 %v251_v3  ;;  %1027 = vmatpush3.msra.mxu1 %v1222_v42 }
  0x7d   :  { %1001 = vmatprep.subr.mxu0 %v1120_v0  ;;  %1028 = vmatprep.subr.mxu1 %v1120_v0 }
  0x7e   :  { %1002 = vmatpush3.msra.mxu0 %v258_v19  ;;  %1003 = vmatprep.mubr.msk.f32.mxu0 %vm1121_vm0, %v1120_v0 }
  0x7f   :  { %1029 = vmatpush3.msra.mxu1 %v1239_v49  ;;  %1004 = vmatmul.mubr.f32.vlgmr.msra.gmra.mxu0 %v1267_v1 }
  0x80   :  { %1030 = vmatprep.subr.mxu1 %v1120_v0  ;;  %1038 = vmatprep.mubr.msk.f32.mxu1 %vm1121_vm0, %v1120_v0 }
  0x81   :  { %1031 = vmatpush3.msra.mxu1 %v1258_v60 }
  0x82   :  { %1032 = vmatprep.subr.mxu1 %v1120_v0 }
  0x83   :  { %1033 = vmatpush3.msra.mxu1 %v1265_v63 }
  0x84   :  { %1034 = vmatprep.subr.mxu1 %v1120_v0 }
  0x85   :  { %1035 = vmatpush3.msra.mxu1 %v1282_v14 }
  0x86   :  { %1036 = vmatprep.subr.mxu1 %v1120_v0 }
  0x87   :  { %1037 = vmatpush3.msra.mxu1 %v1294_v33 }
  0x88   :  { %1039 = vmatmul.mubr.f32.vlgmr.msra.gmra.mxu1 %v1267_v1 }
  0xfd   :  { %v146_v4 = vpop.f32.mrf.mxu0 }
  0xff   :  { %v865_v5 = vpop.f32.mrf.mxu0 }
 0x104   :  { %v297_v6 = vpop.f32.mrf.mxu1 }
 0x105   :  { %v298_v18 = vadd.f32 %v297_v6, %v146_v4 }
 0x106   :  { %v900_v10 = vpop.f32.mrf.mxu1 }
 0x11d   :  { %v401_v11 = vpop.f32.mrf.mxu0 }
 0x11e   :  { %v402_v21 = vadd.f32 %v401_v11, %v298_v18 }
 0x11f   :  { %v935_v12 = vpop.f32.mrf.mxu0 }
 0x126   :  { %v490_v15 = vpop.f32.mrf.mxu1 }
 0x127   :  { %v491_v22 = vadd.f32 %v490_v15, %v402_v21 }
 0x128   :  { %v970_v16 = vpop.f32.mrf.mxu1 }
 0x13f   :  { %v609_v17 = vpop.f32.mrf.mxu0 }
 0x140   :  { %v610_v23 = vadd.f32 %v609_v17, %v491_v22 }
 0x141   :  { %v1005_v20 = vpop.f32.mrf.mxu0 }
 0x148   :  { %v696_v24 = vpop.f32.mrf.mxu1 }
 0x149   :  { %v697_v0 = vadd.f32 %v696_v24, %v610_v23 }
 0x14a   :  { %v1040_v25 = vpop.f32.mrf.mxu1 }
 0x14b   :  { %v700_v27 = vmax.f32 %v697_v0, 1e-24 }
 0x14d   :  { %1048 = vrsqrt.f32 %v700_v27 }
 0x15a   :  { %v1049_v28 = vpop.eup %1048 }
 0x15b   :  { %v702_v30 = vmul.f32 %v1049_v28, %v1235_v48 }
 0x15d   :  { %v710_v35 = vmul.f32 %v728_v29, %v702_v30 }
 0x15f   :  { %711 = vst [vmem:[#allocation7] sm:$0xf] %v710_v35 }
 0x160   :  { %1101 = shalt.err (!%p1098_p0)
}
 0x161   :  { %721 = dma.vmem_to_hbm [thread:$0]  %s719_s25, 64, %s1526_s3, [#allocation4]  }
 0x162   :  { %1114 = dma.done.wait [#allocation4], 64  }
 0x163   :  { %1115 = vsyncadd [#allocation4], 4294967232 }
 0x164   :  { %725 = vsyncpa [#allocation3], 1 }
 0x165   :  { %726 = vsyncpa [#allocation6], 1 }
 0x166   :  { %727 = vsyncpa [#allocation4], 1 }

</bundles_post_ra>
